<compile_context>
chip_gen: v5e
topology: v5e:2x2
jax: 0.10.0
libtpu: 0.0.40
codegen_flags: <defaults>
</compile_context>

<pallas_src>
from functools import partial

import jax
import jax.numpy as jnp
from jax.experimental import pallas as pl
from jax.experimental.pallas import tpu as pltpu

KH = KW = 5      # Conv2d kernel size
POOL = 2         # MaxPool2d(2)


def _round_up(x, m):
    return (x + m - 1) // m * m


def lenet5_conv2_kernel(p_ref, w_ref, b_ref, o_ref, *, n, ho, wo, hp, wp, cpad):
    """Fused im2col-matmul Conv2d + bias + ReLU + MaxPool2d(2).

    p_ref: (MPAD, KPAD)    bf16  im2col patch matrix, rows ordered (n, ho, wo)
    w_ref: (KPAD, CPAD)    bf16  flattened conv weights, zero-padded channels
    b_ref: (1, CPAD)       f32   bias, zero-padded channels
    o_ref: (n*hp*wp, CPAD) f32   pooled output, lane-dense (CPAD = 128)
    """
    # Single MXU matmul: bf16 operands, f32 accumulation.
    acc = jnp.dot(p_ref[...], w_ref[...], preferred_element_type=jnp.float32)

    # Bias + ReLU on dense 128-lane vregs.
    acc = jnp.maximum(acc + b_ref[...], 0.0)

    # MaxPool2d(2): two size-2 reductions; lane (channel) dim untouched.
    y = acc[:n * ho * wo].reshape(n, ho, wp, POOL, cpad)
    y = jnp.max(y, axis=3)                      # pool along W -> (n, ho, wp, cpad)
    y = y.reshape(n, hp, POOL, wp, cpad)
    y = jnp.max(y, axis=2)                      # pool along H -> (n, hp, wp, cpad)

    # One unmasked, lane-dense store.
    o_ref[...] = y.reshape(n * hp * wp, cpad)


def lenet5_conv2_forward(x_nchw, w_oihw, bias):
    """PyTorch-equivalent forward: x NCHW, weight OIHW, bias (Cout,) -> NCHW."""
    N, CIN, H, W = x_nchw.shape
    COUT = w_oihw.shape[0]
    HO, WO = H - (KH - 1), W - (KW - 1)
    HP, WP = HO // POOL, WO // POOL

    K = KH * KW * CIN
    KPAD = _round_up(K, 8)                      # sublane-aligned contraction dim
    CPAD = _round_up(max(COUT, 128), 128)       # lane-dense output channels
    M = N * HO * WO
    MPAD = _round_up(M, 8)

    x_nhwc = jnp.transpose(x_nchw, (0, 2, 3, 1)).astype(jnp.float32)

    # im2col in the wrapper (plain XLA): rows ordered (n, ho, wo), K ordered (kh, kw, cin).
    patches = jnp.stack(
        [x_nhwc[:, kh:kh + HO, kw:kw + WO, :] for kh in range(KH) for kw in range(KW)],
        axis=3,
    ).reshape(M, K)
    patches = jnp.pad(patches, ((0, MPAD - M), (0, KPAD - K))).astype(jnp.bfloat16)

    # Flatten weights to (K, COUT) with matching (kh, kw, cin) order; pad; cast to bf16.
    w_flat = jnp.transpose(w_oihw, (2, 3, 1, 0)).astype(jnp.float32).reshape(K, COUT)
    w_flat = jnp.pad(w_flat, ((0, KPAD - K), (0, CPAD - COUT))).astype(jnp.bfloat16)

    b2d = jnp.pad(bias.astype(jnp.float32).reshape(1, COUT), ((0, 0), (0, CPAD - COUT)))

    out = pl.pallas_call(
        partial(lenet5_conv2_kernel, n=N, ho=HO, wo=WO, hp=HP, wp=WP, cpad=CPAD),
        out_shape=jax.ShapeDtypeStruct((N * HP * WP, CPAD), jnp.float32),
        in_specs=[
            pl.BlockSpec(memory_space=pltpu.MemorySpace.VMEM),
            pl.BlockSpec(memory_space=pltpu.MemorySpace.VMEM),
            pl.BlockSpec(memory_space=pltpu.MemorySpace.VMEM),
        ],
        out_specs=pl.BlockSpec(memory_space=pltpu.MemorySpace.VMEM),
    )(patches, w_flat, b2d)

    # Slice valid channels and restore PyTorch NCHW.
    out_nhwc = out.reshape(N, HP, WP, CPAD)[:, :, :, :COUT]
    return jnp.transpose(out_nhwc, (0, 3, 1, 2))


def reference_forward(x_nchw, w_oihw, bias):
    """Pure-JAX reference matching PyTorch semantics."""
    y = jax.lax.conv_general_dilated(
        x_nchw, w_oihw, window_strides=(1, 1), padding="VALID",
        dimension_numbers=("NCHW", "OIHW", "NCHW"))
    y = y + bias[None, :, None, None]
    y = jnp.maximum(y, 0.0)
    y = jax.lax.reduce_window(y, -jnp.inf, jax.lax.max,
                              (1, 1, POOL, POOL), (1, 1, POOL, POOL), "VALID")
    return y


if __name__ == "__main__":
    # LeNet-5 config: conv1_out=6 (input channels here), conv2_out=16.
    CONV1_OUT, CONV2_OUT = 6, 16
    BATCH, HIN, WIN = 2, 12, 12   # matches module's dummy_input spatial size

    key = jax.random.PRNGKey(0)
    kx, kw, kb = jax.random.split(key, 3)
    x = jax.random.normal(kx, (BATCH, CONV1_OUT, HIN, WIN), jnp.float32)          # NCHW
    w = 0.1 * jax.random.normal(kw, (CONV2_OUT, CONV1_OUT, KH, KW), jnp.float32)  # OIHW
    b = 0.1 * jax.random.normal(kb, (CONV2_OUT,), jnp.float32)

    out = lenet5_conv2_forward(x, w, b)
    out = jax.block_until_ready(out)

    ref = jax.block_until_ready(reference_forward(x, w, b))
    assert out.shape == (BATCH, CONV2_OUT, 4, 4), out.shape
    assert jnp.allclose(out, ref, rtol=2e-2, atol=2e-2), "mismatch vs reference"

    print("KERNEL_OK")
</pallas_src>

<mosaic_0001>
module attributes {stable_mosaic.version = 11 : i64} {
  func.func @lenet5_conv2_kernel(%arg0: memref<128x152xbf16, #tpu.memory_space<vmem>>, %arg1: memref<152x128xbf16, #tpu.memory_space<vmem>>, %arg2: memref<1x128xf32, #tpu.memory_space<vmem>>, %arg3: memref<32x128xf32, #tpu.memory_space<vmem>>) attributes {dimension_semantics = [], scalar_prefetch = 0 : i64, scratch_operands = 0 : i64, tpu.core_type = #tpu.core_type<tc>} {
    %c0 = arith.constant 0 : index
    %c0_0 = arith.constant 0 : index
    %0 = vector.load %arg0[%c0, %c0_0] : memref<128x152xbf16, #tpu.memory_space<vmem>>, vector<128x152xbf16>
    %c0_1 = arith.constant 0 : index
    %c0_2 = arith.constant 0 : index
    %1 = vector.load %arg1[%c0_1, %c0_2] : memref<152x128xbf16, #tpu.memory_space<vmem>>, vector<152x128xbf16>
    %cst = arith.constant dense<0.000000e+00> : vector<128x128xf32>
    %2 = tpu.matmul %0, %1, %cst {dimension_numbers = #tpu.dot_dimension_numbers<[1], [0], [0], [1], [0, 0, 1, 1], [], []>} : vector<128x152xbf16>, vector<152x128xbf16>, vector<128x128xf32> -> vector<128x128xf32>
    %c0_3 = arith.constant 0 : index
    %c0_4 = arith.constant 0 : index
    %3 = vector.load %arg2[%c0_3, %c0_4] : memref<1x128xf32, #tpu.memory_space<vmem>>, vector<1x128xf32>
    %4 = vector.broadcast %3 : vector<1x128xf32> to vector<128x128xf32>
    %5 = arith.addf %2, %4 : vector<128x128xf32>
    %cst_5 = arith.constant 0.000000e+00 : f32
    %6 = vector.broadcast %cst_5 : f32 to vector<128x128xf32>
    %7 = arith.maximumf %5, %6 : vector<128x128xf32>
    %8 = vector.shape_cast %7 : vector<128x128xf32> to vector<2x8x4x2x128xf32>
    %cst_6 = arith.constant dense<0xFF800000> : vector<2x8x4x128xf32>
    %9 = vector.multi_reduction <maximumf>, %8, %cst_6 [3] : vector<2x8x4x2x128xf32> to vector<2x8x4x128xf32>
    %10 = vector.shape_cast %9 : vector<2x8x4x128xf32> to vector<2x4x2x4x128xf32>
    %cst_7 = arith.constant dense<0xFF800000> : vector<2x4x4x128xf32>
    %11 = vector.multi_reduction <maximumf>, %10, %cst_7 [2] : vector<2x4x2x4x128xf32> to vector<2x4x4x128xf32>
    %12 = vector.shape_cast %11 : vector<2x4x4x128xf32> to vector<32x128xf32>
    %c0_8 = arith.constant 0 : index
    %c0_9 = arith.constant 0 : index
    %13 = vector.load %arg3[%c0_8, %c0_9] : memref<32x128xf32, #tpu.memory_space<vmem>>, vector<32x128xf32>
    tpu.vector_store %arg3[%c0_8, %c0_9], %12 {strides = array<i32>} : memref<32x128xf32, #tpu.memory_space<vmem>>, vector<32x128xf32>,
    return
  }
}

</mosaic_0001>

<bundles_post_ra>
// kernel: tpu_custom_call.1
= control target key start
LH: loop header
LB: loop body
LE: loop exit
PB: predicated region body
PF: predicated region fallthrough
CT: control target
= control target key end

     0   :  { %vm209_vm0 = vcmask 1043456   ;;  %s1646_s0 = inlined_call_operand.vmem [shape: bf16[128,152], index: 0, kind: input, shape index: {}]   ;;  %s1647_s1 = inlined_call_operand.vmem [shape: bf16[152,128], index: 1, kind: input, shape index: {}]   ;;  %s1648_s2 = inlined_call_operand.vmem [shape: f32[1,128], index: 2, kind: input, shape index: {}]   ;;  %s1649_s3 = inlined_call_operand.hbm [shape: f32[32,128], index: 3, kind: output, shape index: {}]  }
   0x1   :  { %v1144_v0 = vld [vmem:[%s1647_s1 + $0x38] sm:$0xff]  ;;  %v50_v1 = vld [vmem:[%s1647_s1 + $0x48] sm:$0xf]  ;;  %v1143_v3 = vld [vmem:[%s1647_s1 + $0x30] sm:$0xff] }
   0x2   :  { %v164_v2 = vunpack.c.l.b16 %v50_v1  ;;  %213 = vmatpush.bf16.msra.mxu0 %v1144_v0  ;;  %1146 = vmatpush.bf16.msra.mxu2 %v1144_v0  ;;  %v1145_v6 = vld [vmem:[%s1647_s1 + $0x40] sm:$0xff]  ;;  %v1142_v7 = vld [vmem:[%s1647_s1 + $0x28] sm:$0xff]  ;;  %v1131_v10 = vld [vmem:[%s1646_s0 + $0x54] sm:$0xf] }
   0x3   :  { %v1121_v8 = vld [vmem:[%s1646_s0 + $0x4] sm:$0xf]  ;;  %v1017_v9 = vld [vmem:[%s1646_s0 + $0x8] sm:$0xf0]  ;;  %v1057_v11 = vld [vmem:[%s1646_s0 + $0x58] sm:$0xf0] }
   0x4   :  { %v174_v4 = vpack.c.b16 %v164_v2, %v164_v2 }
   0x6   :  { %v211_v5 = vsel %vm209_vm0, %v174_v4, 0  ;;  %214 = vmatpush.bf16.msra.mxu0 %v1143_v3  ;;  %1147 = vmatpush.bf16.msra.mxu2 %v1143_v3 }
   0x7   :  { %268 = vmatpush.bf16.msra.mxu1 %v211_v5  ;;  %1154 = vmatpush.bf16.msra.mxu3 %v211_v5 }
   0x8   :  { %8 = vsyncpa [#allocation3], 0  ;;  %v1020_v12 = vor.u32 %v1121_v8, %v1017_v9  ;;  %vm184_vm1 = vcmask 195584   ;;  %v1141_v13 = vld [vmem:[%s1647_s1 + $0x20] sm:$0xff]  ;;  %v1060_v14 = vor.u32 %v1131_v10, %v1057_v11  ;;  %v1140_v15 = vld [vmem:[%s1647_s1 + $0x18] sm:$0xff]  ;;  %vm439_vm2 = vcmask 1041408  }
   0x9   :  { %v1139_v16 = vld [vmem:[%s1647_s1 + $0x10] sm:$0xff]  ;;  %v1138_v17 = vld [vmem:[%s1647_s1 + $0x8] sm:$0xff]  ;;  %v1025_v19 = vld [vmem:[%s1646_s0 + $0x18] sm:$0xf0]  ;;  %vm952_vm3 = vcmask 1041409   ;;  %vm954_vm4 = vcmask 1042434  }
   0xa   :  { %215 = vmatpush.bf16.msra.mxu0 %v1142_v7  ;;  %1148 = vmatpush.bf16.msra.mxu2 %v1142_v7  ;;  %v1123_v18 = vld [vmem:[%s1646_s0 + $0x14] sm:$0xf]  ;;  %v1133_v20 = vld [vmem:[%s1646_s0 + $0x64] sm:$0xf]  ;;  %v1065_v21 = vld [vmem:[%s1646_s0 + $0x68] sm:$0xf0] }
   0xb   :  { %269 = vmatpush.bf16.msra.mxu1 %v1145_v6  ;;  %1155 = vmatpush.bf16.msra.mxu3 %v1145_v6  ;;  %v1028_v22 = vor.u32 %v1123_v18, %v1025_v19  ;;  %v1137_v23 = vld [vmem:[%s1647_s1] sm:$0xff]  ;;  %v1122_v25 = vld [vmem:[%s1646_s0 + $0x4] sm:$0xf0]  ;;  %v1068_v26 = vor.u32 %v1133_v20, %v1065_v21  ;;  %v1033_v32 = vld [vmem:[%s1646_s0 + $0x28] sm:$0xf0]  ;;  %vm956_vm5 = vcmask 1043459  }
   0xc   :  { %v1015_v24 = vld [vmem:[%s1646_s0] sm:$0xf]  ;;  %v1130_v28 = vld [vmem:[%s1646_s0 + $0x44] sm:$0xf0]  ;;  %v1125_v31 = vld [vmem:[%s1646_s0 + $0x24] sm:$0xf] }
   0xd   :  { %v1047_v27 = vld [vmem:[%s1646_s0 + $0x40] sm:$0xf]  ;;  %v1016_v29 = vor.u32 %v1122_v25, %v1015_v24  ;;  %v1135_v33 = vld [vmem:[%s1646_s0 + $0x74] sm:$0xf]  ;;  %v1073_v34 = vld [vmem:[%s1646_s0 + $0x78] sm:$0xf0]  ;;  %v1036_v35 = vor.u32 %v1125_v31, %v1033_v32 }
   0xe   :  { %1113 = vmatmul.msk.bf16.vlgmr.msra.gmra.mxu1 %vm184_vm1, %v1020_v12  ;;  %216 = vmatpush.bf16.msra.mxu0 %v1141_v13  ;;  %v1048_v30 = vor.u32 %v1130_v28, %v1047_v27  ;;  %v1023_v36 = vld [vmem:[%s1646_s0 + $0x10] sm:$0xf]  ;;  %v1124_v37 = vld [vmem:[%s1646_s0 + $0x14] sm:$0xf0]  ;;  %v1076_v38 = vor.u32 %v1135_v33, %v1073_v34  ;;  %v1127_v43 = vld [vmem:[%s1646_s0 + $0x34] sm:$0xf] }
   0xf   :  { %1118 = vmatmul.msk.bf16.vlgmr.msra.gmra.mxu3 %vm184_vm1, %v1060_v14  ;;  %1149 = vmatpush.bf16.msra.mxu2 %v1141_v13  ;;  %v1055_v39 = vld [vmem:[%s1646_s0 + $0x50] sm:$0xf]  ;;  %v1132_v40 = vld [vmem:[%s1646_s0 + $0x54] sm:$0xf0]  ;;  %v1024_v41 = vor.u32 %v1124_v37, %v1023_v36  ;;  %v1041_v44 = vld [vmem:[%s1646_s0 + $0x38] sm:$0xf0] }
  0x10   :  { %v1056_v42 = vor.u32 %v1132_v40, %v1055_v39  ;;  %v1044_v45 = vor.u32 %v1127_v43, %v1041_v44  ;;  %v1031_v46 = vld [vmem:[%s1646_s0 + $0x20] sm:$0xf]  ;;  %v1126_v47 = vld [vmem:[%s1646_s0 + $0x24] sm:$0xf0]  ;;  %v1129_v52 = vld [vmem:[%s1646_s0 + $0x44] sm:$0xf] }
  0x11   :  { %v1063_v48 = vld [vmem:[%s1646_s0 + $0x60] sm:$0xf]  ;;  %v1134_v49 = vld [vmem:[%s1646_s0 + $0x64] sm:$0xf0]  ;;  %v1032_v50 = vor.u32 %v1126_v47, %v1031_v46  ;;  %v1049_v53 = vld [vmem:[%s1646_s0 + $0x48] sm:$0xf0] }
  0x12   :  { %217 = vmatpush.bf16.msra.mxu0 %v1140_v15  ;;  %v1064_v51 = vor.u32 %v1134_v49, %v1063_v48  ;;  %v1052_v54 = vor.u32 %v1129_v52, %v1049_v53  ;;  %v1039_v55 = vld [vmem:[%s1646_s0 + $0x30] sm:$0xf]  ;;  %v1128_v56 = vld [vmem:[%s1646_s0 + $0x34] sm:$0xf0]  ;;  %v1347_v61 = vld [vmem:[%s1648_s2] ss:$0 sm:$0xff] }
  0x13   :  { %1150 = vmatpush.bf16.msra.mxu2 %v1140_v15  ;;  %v1071_v57 = vld [vmem:[%s1646_s0 + $0x70] sm:$0xf]  ;;  %v1136_v58 = vld [vmem:[%s1646_s0 + $0x74] sm:$0xf0]  ;;  %v1040_v59 = vor.u32 %v1128_v56, %v1039_v55  ;;  %vm958_vm6 = vcmask 1044484   ;;  %vm960_vm7 = vcmask 1045509  }
  0x14   :  { %v1072_v60 = vor.u32 %v1136_v58, %v1071_v57  ;;  %vm962_vm8 = vcmask 1046534   ;;  %vm964_vm9 = vcmask 1047559   ;;  %s1001_s19 = sshll.u32 %s1649_s3, 4  ;;  %s1188_s20 = smov 128   ;;  %s1002_s19 = int_to_ptr.hbm [resolvable:$true] %s1001_s19 }
  0x15   :  { %s1189_s21 = smov 8  }
  0x16   :  { %218 = vmatpush.bf16.msra.mxu0 %v1139_v16 }
  0x17   :  { %1151 = vmatpush.bf16.msra.mxu2 %v1139_v16 }
  0x1a   :  { %219 = vmatpush.bf16.msra.mxu0 %v1138_v17 }
  0x1b   :  { %1152 = vmatpush.bf16.msra.mxu2 %v1138_v17 }
  0x1e   :  { %1114 = vmatmul.msk.bf16.gmra.mxu1 %vm184_vm1, %v1028_v22  ;;  %220 = vmatpush.bf16.msra.mxu0 %v1137_v23 }
  0x1f   :  { %1119 = vmatmul.msk.bf16.gmra.mxu3 %vm184_vm1, %v1068_v26  ;;  %1153 = vmatpush.bf16.msra.mxu2 %v1137_v23 }
  0x21   :  { %221 = vmatmul.bf16.vlgmr.msra.gmra.mxu0 %v1016_v29 }
  0x22   :  { %241 = vmatmul.bf16.vlgmr.msra.gmra.mxu2 %v1048_v30 }
  0x2e   :  { %1115 = vmatmul.msk.bf16.gmra.mxu1 %vm184_vm1, %v1036_v35 }
  0x2f   :  { %1120 = vmatmul.msk.bf16.gmra.mxu3 %vm184_vm1, %v1076_v38 }
  0x31   :  { %226 = vmatmul.bf16.gmra.mxu0 %v1024_v41 }
  0x32   :  { %246 = vmatmul.bf16.gmra.mxu2 %v1056_v42 }
  0x3e   :  { %1116 = vmatmul.msk.bf16.gmra.mxu1 %vm184_vm1, %v1044_v45 }
  0x41   :  { %231 = vmatmul.bf16.gmra.mxu0 %v1032_v50 }
  0x42   :  { %251 = vmatmul.bf16.gmra.mxu2 %v1064_v51 }
  0x4e   :  { %1117 = vmatmul.msk.bf16.gmra.mxu1 %vm184_vm1, %v1052_v54 }
  0x51   :  { %236 = vmatmul.bf16.gmra.mxu0 %v1040_v59 }
  0x52   :  { %256 = vmatmul.bf16.gmra.mxu2 %v1072_v60 }
  0x8b   :  { %v271_v62 = vpop.f32.mrf.mxu1 }
  0x93   :  { %v273_v14 = vpop.f32.mrf.mxu1 }
  0x9b   :  { %v276_v52 = vpop.f32.mrf.mxu1 }
  0x9e   :  { %v222_v63 = vpop.f32.mrf.mxu0 }
  0x9f   :  { %v223_v0 = vadd.f32 %v1347_v61, %v222_v63 }
  0xa1   :  { %v272_v1 = vadd.f32 %v271_v62, %v223_v0 }
  0xa3   :  { %v311_v2 = vmax.f32 %v272_v1, 0.0 }
  0xa5   :  { %v343_v3 = vrot.slane %v311_v2, 2  ;;  %v344_v4 = vrot.slane %v311_v2, 4  ;;  %v345_v5 = vrot.slane %v311_v2, 6  ;;  %v440_v6 = vsel %vm439_vm2, %v311_v2, -inf  ;;  %v1351_v7 = vpop.f32.mrf.mxu2 }
  0xa6   :  { %v441_v8 = vrot.slane %v440_v6, 4  ;;  %v224_v9 = vpop.f32.mrf.mxu0 }
  0xa7   :  { %v447_v10 = vsel %vm439_vm2, %v343_v3, -inf  ;;  %v454_v11 = vsel %vm439_vm2, %v344_v4, -inf  ;;  %v461_v12 = vsel %vm439_vm2, %v345_v5, -inf  ;;  %v225_v13 = vadd.f32 %v1347_v61, %v224_v9  ;;  %v296_v5 = vpop.f32.mrf.mxu3 }
  0xa8   :  { %v442_v15 = vmax.f32 %v440_v6, %v441_v8  ;;  %v448_v16 = vrot.slane %v447_v10, 4  ;;  %v455_v17 = vrot.slane %v454_v11, 4  ;;  %v462_v18 = vrot.slane %v461_v12, 4 }
  0xa9   :  { %v274_v19 = vadd.f32 %v273_v14, %v225_v13 }
  0xaa   :  { %v449_v20 = vmax.f32 %v447_v10, %v448_v16  ;;  %v443_v22 = vrot.slane %v442_v15, 2  ;;  %v456_v23 = vmax.f32 %v454_v11, %v455_v17  ;;  %v463_v24 = vmax.f32 %v461_v12, %v462_v18 }
  0xab   :  { %v312_v21 = vmax.f32 %v274_v19, 0.0 }
  0xac   :  { %v450_v30 = vrot.slane %v449_v20, 2  ;;  %v444_v35 = vmax.f32 %v442_v15, %v443_v22  ;;  %v457_v36 = vrot.slane %v456_v23, 2  ;;  %v464_v37 = vrot.slane %v463_v24, 2 }
  0xad   :  { %v346_v25 = vrot.slane %v312_v21, 2  ;;  %v347_v26 = vrot.slane %v312_v21, 4  ;;  %v348_v27 = vrot.slane %v312_v21, 6  ;;  %v468_v28 = vsel %vm439_vm2, %v312_v21, -inf  ;;  %v1358_v29 = vpop.f32.mrf.mxu2 }
  0xae   :  { %v469_v31 = vrot.slane %v468_v28, 4  ;;  %v227_v42 = vpop.f32.mrf.mxu0  ;;  %v451_v43 = vmax.f32 %v449_v20, %v450_v30  ;;  %v445_v48 = vrot.slane %v444_v35, 1  ;;  %v458_v49 = vmax.f32 %v456_v23, %v457_v36 }
  0xaf   :  { %v475_v32 = vsel %vm439_vm2, %v346_v25, -inf  ;;  %v482_v33 = vsel %vm439_vm2, %v347_v26, -inf  ;;  %v489_v34 = vsel %vm439_vm2, %v348_v27, -inf  ;;  %v465_v50 = vmax.f32 %v463_v24, %v464_v37 }
  0xb0   :  { %v470_v38 = vmax.f32 %v468_v28, %v469_v31  ;;  %v476_v39 = vrot.slane %v475_v32, 4  ;;  %v483_v40 = vrot.slane %v482_v33, 4  ;;  %v490_v41 = vrot.slane %v489_v34, 4 }
  0xb1   :  { %v228_v51 = vadd.f32 %v1347_v61, %v227_v42  ;;  %v452_v60 = vrot.slane %v451_v43, 1  ;;  %v446_v1 = vmax.f32 %v444_v35, %v445_v48  ;;  %v459_v2 = vrot.slane %v458_v49, 1 }
  0xb2   :  { %v471_v44 = vrot.slane %v470_v38, 2  ;;  %v477_v45 = vmax.f32 %v475_v32, %v476_v39  ;;  %v484_v46 = vmax.f32 %v482_v33, %v483_v40  ;;  %v491_v47 = vmax.f32 %v489_v34, %v490_v41  ;;  %v278_v33 = vpop.f32.mrf.mxu1 }
  0xb3   :  { %v277_v58 = vadd.f32 %v276_v52, %v228_v51  ;;  %v466_v3 = vrot.slane %v465_v50, 1  ;;  %v453_v15 = vmax.f32 %v451_v43, %v452_v60  ;;  %v460_v23 = vmax.f32 %v458_v49, %v459_v2 }
  0xb4   :  { %v472_v53 = vmax.f32 %v470_v38, %v471_v44  ;;  %v478_v54 = vrot.slane %v477_v45, 2  ;;  %v485_v55 = vrot.slane %v484_v46, 2  ;;  %v492_v56 = vrot.slane %v491_v47, 2 }
  0xb5   :  { %v247_v57 = vpop.f32.mrf.mxu2  ;;  %v313_v4 = vmax.f32 %v277_v58, 0.0  ;;  %v1371_v34 = vadd.f32 %v1347_v61, %v1351_v7 }
  0xb6   :  { %v248_v59 = vadd.f32 %v1347_v61, %v247_v57  ;;  %v473_v62 = vrot.slane %v472_v53, 1  ;;  %v479_v63 = vmax.f32 %v477_v45, %v478_v54  ;;  %v486_v0 = vmax.f32 %v484_v46, %v485_v55  ;;  %v229_v27 = vpop.f32.mrf.mxu0 }
  0xb7   :  { %v493_v9 = vmax.f32 %v491_v47, %v492_v56  ;;  %v349_v11 = vrot.slane %v313_v4, 2  ;;  %v350_v12 = vrot.slane %v313_v4, 4  ;;  %v351_v13 = vrot.slane %v313_v4, 6 }
  0xb8   :  { %v480_v6 = vrot.slane %v479_v63, 1  ;;  %v487_v8 = vrot.slane %v486_v0, 1  ;;  %v297_v10 = vadd.f32 %v296_v5, %v248_v59  ;;  %v496_v14 = vsel %vm439_vm2, %v313_v4, -inf }
  0xb9   :  { %v474_v16 = vmax.f32 %v472_v53, %v473_v62  ;;  %v497_v19 = vrot.slane %v496_v14, 4  ;;  %v503_v20 = vsel %vm439_vm2, %v349_v11, -inf  ;;  %v510_v21 = vsel %vm439_vm2, %v350_v12, -inf }
  0xba   :  { %v481_v17 = vmax.f32 %v479_v63, %v480_v6  ;;  %v488_v18 = vmax.f32 %v486_v0, %v487_v8  ;;  %v517_v22 = vsel %vm439_vm2, %v351_v13, -inf  ;;  %v494_v24 = vrot.slane %v493_v9, 1 }
  0xbb   :  { %v504_v26 = vrot.slane %v503_v20, 4  ;;  %v498_v28 = vmax.f32 %v496_v14, %v497_v19  ;;  %v511_v30 = vrot.slane %v510_v21, 4  ;;  %v518_v31 = vrot.slane %v517_v22, 4 }
  0xbc   :  { %v889_v25 = vmax.f32 %v453_v15, %v481_v17  ;;  %v321_v32 = vmax.f32 %v297_v10, 0.0  ;;  %v888_v35 = vmax.f32 %v446_v1, %v474_v16  ;;  %v890_v37 = vmax.f32 %v460_v23, %v488_v18  ;;  %v1387_v10 = vpop.f32.mrf.mxu1 }
  0xbd   :  { %v505_v36 = vmax.f32 %v503_v20, %v504_v26  ;;  %v499_v38 = vrot.slane %v498_v28, 2  ;;  %v512_v39 = vmax.f32 %v510_v21, %v511_v30  ;;  %v230_v40 = vadd.f32 %v1347_v61, %v229_v27 }
  0xbe   :  { %v953_v41 = vsel %vm952_vm3, %v889_v25, %v888_v35  ;;  %v519_v42 = vmax.f32 %v517_v22, %v518_v31  ;;  %v373_v43 = vrot.slane %v321_v32, 2  ;;  %v374_v44 = vrot.slane %v321_v32, 4 }
  0xbf   :  { %v467_v45 = vmax.f32 %v465_v50, %v466_v3  ;;  %v495_v46 = vmax.f32 %v493_v9, %v494_v24  ;;  %v506_v47 = vrot.slane %v505_v36, 2  ;;  %v375_v48 = vrot.slane %v321_v32, 6 }
  0xc0   :  { %v500_v49 = vmax.f32 %v498_v28, %v499_v38  ;;  %v720_v7 = vsel %vm439_vm2, %v321_v32, -inf  ;;  %v727_v51 = vsel %vm439_vm2, %v373_v43, -inf  ;;  %v734_v52 = vsel %vm439_vm2, %v374_v44, -inf  ;;  %v232_v32 = vpop.f32.mrf.mxu0 }
  0xc1   :  { %v955_v53 = vsel %vm954_vm4, %v890_v37, %v953_v41  ;;  %v513_v54 = vrot.slane %v512_v39, 2  ;;  %v721_v55 = vrot.slane %v720_v7, 4  ;;  %v279_v56 = vadd.f32 %v278_v33, %v230_v40 }
  0xc2   :  { %v520_v57 = vrot.slane %v519_v42, 2  ;;  %v728_v58 = vrot.slane %v727_v51, 4  ;;  %v735_v59 = vrot.slane %v734_v52, 4  ;;  %v741_v50 = vsel %vm439_vm2, %v375_v48, -inf }
  0xc3   :  { %v891_v60 = vmax.f32 %v467_v45, %v495_v46  ;;  %v1382_v62 = vadd.f32 %v1347_v61, %v1358_v29  ;;  %v507_v63 = vmax.f32 %v505_v36, %v506_v47  ;;  %v722_v0 = vmax.f32 %v720_v7, %v721_v55  ;;  %v249_v29 = vpop.f32.mrf.mxu2 }
  0xc4   :  { %v501_v1 = vrot.slane %v500_v49, 1  ;;  %v729_v2 = vmax.f32 %v727_v51, %v728_v58  ;;  %v736_v3 = vmax.f32 %v734_v52, %v735_v59  ;;  %v742_v4 = vrot.slane %v741_v50, 4 }
  0xc5   :  { %v1385_v5 = vsel %vm956_vm5, %v891_v60, %v955_v53  ;;  %v514_v6 = vmax.f32 %v512_v39, %v513_v54  ;;  %v723_v8 = vrot.slane %v722_v0, 2  ;;  %v314_v9 = vmax.f32 %v279_v56, 0.0  ;;  %v1402_v56 = vpop.f32.mrf.mxu1 }
  0xc6   :  { %v521_v11 = vmax.f32 %v519_v42, %v520_v57  ;;  %v730_v12 = vrot.slane %v729_v2, 2  ;;  %v737_v13 = vrot.slane %v736_v3, 2  ;;  %v743_v14 = vmax.f32 %v741_v50, %v742_v4  ;;  %v298_v42 = vpop.f32.mrf.mxu3 }
  0xc7   :  { %v508_v15 = vrot.slane %v507_v63, 1  ;;  %v352_v16 = vrot.slane %v314_v9, 2  ;;  %v353_v17 = vrot.slane %v314_v9, 4  ;;  %v354_v18 = vrot.slane %v314_v9, 6 }
  0xc8   :  { %v1389_v19 = vmax.f32 %v500_v49, %v501_v1  ;;  %v724_v20 = vmax.f32 %v722_v0, %v723_v8  ;;  %v731_v21 = vmax.f32 %v729_v2, %v730_v12  ;;  %v524_v22 = vsel %vm439_vm2, %v314_v9, -inf }
  0xc9   :  { %v525_v23 = vrot.slane %v524_v22, 4  ;;  %v531_v24 = vsel %vm439_vm2, %v352_v16, -inf  ;;  %v538_v25 = vsel %vm439_vm2, %v353_v17, -inf  ;;  %v250_v26 = vadd.f32 %v1347_v61, %v249_v29  ;;  %v234_v16 = vpop.f32.mrf.mxu0 }
  0xca   :  { %v515_v27 = vrot.slane %v514_v6, 1  ;;  %v738_v28 = vmax.f32 %v736_v3, %v737_v13  ;;  %v744_v30 = vrot.slane %v743_v14, 2  ;;  %v532_v31 = vrot.slane %v531_v24, 4 }
  0xcb   :  { %v522_v33 = vrot.slane %v521_v11, 1  ;;  %v526_v35 = vmax.f32 %v524_v22, %v525_v23  ;;  %v539_v36 = vrot.slane %v538_v25, 4  ;;  %v545_v37 = vsel %vm439_vm2, %v354_v18, -inf  ;;  %v252_v50 = vpop.f32.mrf.mxu2 }
  0xcc   :  { %v1396_v38 = vmax.f32 %v507_v63, %v508_v15  ;;  %v725_v39 = vrot.slane %v724_v20, 1  ;;  %v732_v40 = vrot.slane %v731_v21, 1  ;;  %v533_v41 = vmax.f32 %v531_v24, %v532_v31 }
  0xcd   :  { %v527_v43 = vrot.slane %v526_v35, 2  ;;  %v540_v44 = vmax.f32 %v538_v25, %v539_v36  ;;  %v546_v45 = vrot.slane %v545_v37, 4  ;;  %v299_v46 = vadd.f32 %v298_v42, %v250_v26 }
  0xce   :  { %v1398_v47 = vmax.f32 %v514_v6, %v515_v27  ;;  %v739_v48 = vrot.slane %v738_v28, 1  ;;  %v745_v49 = vmax.f32 %v743_v14, %v744_v30  ;;  %v534_v7 = vrot.slane %v533_v41, 2  ;;  %v301_v26 = vpop.f32.mrf.mxu3 }
  0xcf   :  { %v528_v51 = vmax.f32 %v526_v35, %v527_v43  ;;  %v541_v52 = vrot.slane %v540_v44, 2  ;;  %v547_v53 = vmax.f32 %v545_v37, %v546_v45  ;;  %v322_v54 = vmax.f32 %v299_v46, 0.0 }
  0xd0   :  { %v1400_v55 = vmax.f32 %v521_v11, %v522_v33  ;;  %v1404_v57 = vmax.f32 %v724_v20, %v725_v39  ;;  %v1406_v58 = vmax.f32 %v731_v21, %v732_v40  ;;  %v233_v59 = vadd.f32 %v1347_v61, %v232_v32 }
  0xd1   :  { %v535_v60 = vmax.f32 %v533_v41, %v534_v7  ;;  %v542_v63 = vmax.f32 %v540_v44, %v541_v52  ;;  %v548_v0 = vrot.slane %v547_v53, 2  ;;  %v376_v1 = vrot.slane %v322_v54, 2  ;;  %v1424_v41 = vpop.f32.mrf.mxu1 }
  0xd2   :  { %v746_v2 = vrot.slane %v745_v49, 1  ;;  %v377_v3 = vrot.slane %v322_v54, 4  ;;  %v378_v4 = vrot.slane %v322_v54, 6  ;;  %v748_v6 = vsel %vm439_vm2, %v322_v54, -inf }
  0xd3   :  { %v1410_v8 = vmax.f32 %v738_v28, %v739_v48  ;;  %v529_v9 = vrot.slane %v528_v51, 1  ;;  %v749_v11 = vrot.slane %v748_v6, 4  ;;  %v253_v12 = vadd.f32 %v1347_v61, %v252_v50 }
  0xd4   :  { %v755_v13 = vsel %vm439_vm2, %v376_v1, -inf  ;;  %v762_v14 = vsel %vm439_vm2, %v377_v3, -inf  ;;  %v769_v29 = vsel %vm439_vm2, %v378_v4, -inf  ;;  %v282_v15 = vadd.f32 %v1387_v10, %v233_v59 }
  0xd5   :  { %v536_v17 = vrot.slane %v535_v60, 1  ;;  %v543_v18 = vrot.slane %v542_v63, 1  ;;  %v549_v20 = vmax.f32 %v547_v53, %v548_v0  ;;  %v750_v21 = vmax.f32 %v748_v6, %v749_v11 }
  0xd6   :  { %v1417_v22 = vmax.f32 %v745_v49, %v746_v2  ;;  %v756_v23 = vrot.slane %v755_v13, 4  ;;  %v763_v24 = vrot.slane %v762_v14, 4  ;;  %v770_v25 = vrot.slane %v769_v29, 4 }
  0xd7   :  { %v530_v27 = vmax.f32 %v528_v51, %v529_v9  ;;  %v751_v28 = vrot.slane %v750_v21, 2  ;;  %v302_v30 = vadd.f32 %v301_v26, %v253_v12  ;;  %v235_v31 = vadd.f32 %v1347_v61, %v234_v16 }
  0xd8   :  { %v757_v32 = vmax.f32 %v755_v13, %v756_v23  ;;  %v764_v33 = vmax.f32 %v762_v14, %v763_v24  ;;  %v771_v10 = vmax.f32 %v769_v29, %v770_v25  ;;  %v315_v35 = vmax.f32 %v282_v15, 0.0 }
  0xd9   :  { %v1420_v36 = vmax.f32 %v535_v60, %v536_v17  ;;  %v1422_v37 = vmax.f32 %v542_v63, %v543_v18  ;;  %v550_v39 = vrot.slane %v549_v20, 1  ;;  %v752_v40 = vmax.f32 %v750_v21, %v751_v28 }
  0xda   :  { %v758_v42 = vrot.slane %v757_v32, 2  ;;  %v765_v43 = vrot.slane %v764_v33, 2  ;;  %v772_v44 = vrot.slane %v771_v10, 2  ;;  %v355_v45 = vrot.slane %v315_v35, 2 }
  0xdb   :  { %v892_v46 = vmax.f32 %v1389_v19, %v530_v27  ;;  %v356_v48 = vrot.slane %v315_v35, 4  ;;  %v357_v49 = vrot.slane %v315_v35, 6  ;;  %v552_v7 = vsel %vm439_vm2, %v315_v35, -inf }
  0xdc   :  { %v759_v51 = vmax.f32 %v757_v32, %v758_v42  ;;  %v766_v52 = vmax.f32 %v764_v33, %v765_v43  ;;  %v773_v53 = vmax.f32 %v771_v10, %v772_v44  ;;  %v553_v54 = vrot.slane %v552_v7, 4 }
  0xdd   :  { %v559_v59 = vsel %vm439_vm2, %v355_v45, -inf  ;;  %v566_v50 = vsel %vm439_vm2, %v356_v48, -inf  ;;  %v573_v60 = vsel %vm439_vm2, %v357_v49, -inf  ;;  %v323_v63 = vmax.f32 %v302_v30, 0.0  ;;  %v1448_v30 = vpop.f32.mrf.mxu1 }
  0xde   :  { %v1431_v0 = vmax.f32 %v549_v20, %v550_v39  ;;  %v893_v19 = vmax.f32 %v1396_v38, %v1420_v36  ;;  %v753_v1 = vrot.slane %v752_v40, 1  ;;  %v554_v2 = vmax.f32 %v552_v7, %v553_v54 }
  0xdf   :  { %v894_v3 = vmax.f32 %v1398_v47, %v1422_v37  ;;  %v560_v4 = vrot.slane %v559_v59, 4  ;;  %v567_v6 = vrot.slane %v566_v50, 4  ;;  %v574_v9 = vrot.slane %v573_v60, 4 }
  0xe0   :  { %v760_v11 = vrot.slane %v759_v51, 1  ;;  %v767_v12 = vrot.slane %v766_v52, 1  ;;  %v774_v13 = vrot.slane %v773_v53, 1  ;;  %v555_v14 = vrot.slane %v554_v2, 2 }
  0xe1   :  { %v561_v29 = vmax.f32 %v559_v59, %v560_v4  ;;  %v568_v15 = vmax.f32 %v566_v50, %v567_v6  ;;  %v575_v16 = vmax.f32 %v573_v60, %v574_v9  ;;  %v379_v17 = vrot.slane %v323_v63, 2 }
  0xe2   :  { %v1441_v20 = vsel %vm958_vm6, %v892_v46, %v1385_v5  ;;  %v1443_v21 = vmax.f32 %v752_v40, %v753_v1  ;;  %v284_v23 = vadd.f32 %v1402_v56, %v235_v31  ;;  %v380_v27 = vrot.slane %v323_v63, 4 }
  0xe3   :  { %v562_v24 = vrot.slane %v561_v29, 2  ;;  %v569_v25 = vrot.slane %v568_v15, 2  ;;  %v576_v26 = vrot.slane %v575_v16, 2  ;;  %v1446_v28 = vmax.f32 %v759_v51, %v760_v11 }
  0xe4   :  { %v381_v32 = vrot.slane %v323_v63, 6  ;;  %v776_v33 = vsel %vm439_vm2, %v323_v63, -inf  ;;  %v783_v10 = vsel %vm439_vm2, %v379_v17, -inf  ;;  %v1452_v35 = vmax.f32 %v766_v52, %v767_v12 }
  0xe5   :  { %v1454_v5 = vmax.f32 %v773_v53, %v774_v13  ;;  %v556_v39 = vmax.f32 %v554_v2, %v555_v14  ;;  %v777_v40 = vrot.slane %v776_v33, 4  ;;  %v563_v56 = vmax.f32 %v561_v29, %v562_v24 }
  0xe6   :  { %v784_v31 = vrot.slane %v783_v10, 4  ;;  %v790_v42 = vsel %vm439_vm2, %v380_v27, -inf  ;;  %v797_v43 = vsel %vm439_vm2, %v381_v32, -inf  ;;  %v908_v44 = vmax.f32 %v1404_v57, %v1443_v21  ;;  %v291_v32 = vpop.f32.mrf.mxu1 }
  0xe7   :  { %v570_v45 = vmax.f32 %v568_v15, %v569_v25  ;;  %v577_v46 = vmax.f32 %v575_v16, %v576_v26  ;;  %v778_v48 = vmax.f32 %v776_v33, %v777_v40  ;;  %v791_v7 = vrot.slane %v790_v42, 4 }
  0xe8   :  { %v785_v49 = vmax.f32 %v783_v10, %v784_v31  ;;  %v798_v51 = vrot.slane %v797_v43, 4  ;;  %v316_v52 = vmax.f32 %v284_v23, 0.0  ;;  %v557_v50 = vrot.slane %v556_v39, 1 }
  0xe9   :  { %v564_v60 = vrot.slane %v563_v56, 1  ;;  %v779_v63 = vrot.slane %v778_v48, 2  ;;  %v571_v4 = vrot.slane %v570_v45, 1  ;;  %v578_v12 = vrot.slane %v577_v46, 1 }
  0xea   :  { %v786_v1 = vrot.slane %v785_v49, 2  ;;  %v358_v2 = vrot.slane %v316_v52, 2  ;;  %v359_v6 = vrot.slane %v316_v52, 4  ;;  %v360_v9 = vrot.slane %v316_v52, 6 }
  0xeb   :  { %v580_v11 = vsel %vm439_vm2, %v316_v52, -inf  ;;  %v792_v13 = vmax.f32 %v790_v42, %v791_v7  ;;  %v799_v14 = vmax.f32 %v797_v43, %v798_v51  ;;  %v1467_v15 = vmax.f32 %v556_v39, %v557_v50  ;;  %v254_v42 = vpop.f32.mrf.mxu2 }
  0xec   :  { %v581_v29 = vrot.slane %v580_v11, 4  ;;  %v587_v16 = vsel %vm439_vm2, %v358_v2, -inf  ;;  %v594_v17 = vsel %vm439_vm2, %v359_v6, -inf  ;;  %v601_v23 = vsel %vm439_vm2, %v360_v9, -inf  ;;  %v303_v6 = vpop.f32.mrf.mxu3 }
  0xed   :  { %v1472_v24 = vmax.f32 %v563_v56, %v564_v60  ;;  %v780_v25 = vmax.f32 %v778_v48, %v779_v63  ;;  %v787_v26 = vmax.f32 %v785_v49, %v786_v1  ;;  %v1474_v33 = vmax.f32 %v570_v45, %v571_v4 }
  0xee   :  { %v582_v27 = vmax.f32 %v580_v11, %v581_v29  ;;  %v588_v10 = vrot.slane %v587_v16, 4  ;;  %v595_v40 = vrot.slane %v594_v17, 4  ;;  %v602_v31 = vrot.slane %v601_v23, 4 }
  0xef   :  { %v1476_v39 = vmax.f32 %v577_v46, %v578_v12  ;;  %v793_v43 = vrot.slane %v792_v13, 2  ;;  %v800_v7 = vrot.slane %v799_v14, 2  ;;  %v292_v56 = vadd.f32 %v291_v32, %v1371_v34 }
  0xf0   :  { %v583_v51 = vrot.slane %v582_v27, 2  ;;  %v589_v52 = vmax.f32 %v587_v16, %v588_v10  ;;  %v596_v50 = vmax.f32 %v594_v17, %v595_v40  ;;  %v603_v2 = vmax.f32 %v601_v23, %v602_v31 }
  0xf1   :  { %v781_v48 = vrot.slane %v780_v25, 1  ;;  %v788_v49 = vrot.slane %v787_v26, 1  ;;  %v255_v45 = vadd.f32 %v1347_v61, %v254_v42  ;;  %v319_v9 = vmax.f32 %v292_v56, 0.0 }
  0xf2   :  { %v584_v60 = vmax.f32 %v582_v27, %v583_v51  ;;  %v590_v63 = vrot.slane %v589_v52, 2  ;;  %v597_v1 = vrot.slane %v596_v50, 2  ;;  %v604_v4 = vrot.slane %v603_v2, 2 }
  0xf3   :  { %v794_v46 = vmax.f32 %v792_v13, %v793_v43  ;;  %v801_v11 = vmax.f32 %v799_v14, %v800_v7  ;;  %v304_v29 = vadd.f32 %v303_v6, %v255_v45  ;;  %v367_v23 = vrot.slane %v319_v9, 2  ;;  %v257_v18 = vpop.f32.mrf.mxu2 }
  0xf4   :  { %v585_v12 = vrot.slane %v584_v60, 1  ;;  %v591_v59 = vmax.f32 %v589_v52, %v590_v63  ;;  %v598_v16 = vmax.f32 %v596_v50, %v597_v1  ;;  %v605_v17 = vmax.f32 %v603_v2, %v604_v4 }
  0xf5   :  { %v368_v34 = vrot.slane %v319_v9, 4  ;;  %v369_v32 = vrot.slane %v319_v9, 6  ;;  %v664_v27 = vsel %vm439_vm2, %v319_v9, -inf  ;;  %v1481_v54 = vmax.f32 %v780_v25, %v781_v48 }
  0xf6   :  { %v586_v10 = vmax.f32 %v584_v60, %v585_v12  ;;  %v592_v40 = vrot.slane %v591_v59, 1  ;;  %v599_v31 = vrot.slane %v598_v16, 1  ;;  %v606_v42 = vrot.slane %v605_v17, 1 }
  0xf7   :  { %v665_v51 = vrot.slane %v664_v27, 4  ;;  %v671_v13 = vsel %vm439_vm2, %v367_v23, -inf  ;;  %v678_v14 = vsel %vm439_vm2, %v368_v34, -inf  ;;  %v685_v43 = vsel %vm439_vm2, %v369_v32, -inf  ;;  %v237_v34 = vpop.f32.mrf.mxu0 }
  0xf8   :  { %v795_v7 = vrot.slane %v794_v46, 1  ;;  %v593_v52 = vmax.f32 %v591_v59, %v592_v40  ;;  %v600_v50 = vmax.f32 %v598_v16, %v599_v31  ;;  %v672_v56 = vrot.slane %v671_v13, 4 }
  0xf9   :  { %v666_v2 = vmax.f32 %v664_v27, %v665_v51  ;;  %v679_v60 = vrot.slane %v678_v14, 4  ;;  %v686_v45 = vrot.slane %v685_v43, 4  ;;  %v324_v63 = vmax.f32 %v304_v29, 0.0 }
  0xfa   :  { %v802_v1 = vrot.slane %v801_v11, 1  ;;  %v607_v4 = vmax.f32 %v605_v17, %v606_v42  ;;  %v896_v6 = vmax.f32 %v1467_v15, %v586_v10  ;;  %v897_v25 = vmax.f32 %v1472_v24, %v593_v52 }
  0xfb   :  { %v667_v48 = vrot.slane %v666_v2, 2  ;;  %v673_v9 = vmax.f32 %v671_v13, %v672_v56  ;;  %v680_v12 = vmax.f32 %v678_v14, %v679_v60  ;;  %v382_v23 = vrot.slane %v324_v63, 2 }
  0xfc   :  { %v1488_v32 = vmax.f32 %v787_v26, %v788_v49  ;;  %v898_v59 = vmax.f32 %v1474_v33, %v600_v50  ;;  %v383_v16 = vrot.slane %v324_v63, 4  ;;  %v384_v27 = vrot.slane %v324_v63, 6 }
  0xfd   :  { %v966_v40 = vsel %vm952_vm3, %v897_v25, %v896_v6  ;;  %v674_v29 = vrot.slane %v673_v9, 2  ;;  %v681_v31 = vrot.slane %v680_v12, 2  ;;  %v687_v17 = vmax.f32 %v685_v43, %v686_v45  ;;  %v293_v43 = vpop.f32.mrf.mxu1 }
  0xfe   :  { %v1492_v42 = vmax.f32 %v794_v46, %v795_v7  ;;  %v804_v15 = vsel %vm439_vm2, %v324_v63, -inf  ;;  %v811_v24 = vsel %vm439_vm2, %v382_v23, -inf  ;;  %v238_v10 = vadd.f32 %v1347_v61, %v237_v34 }
  0xff   :  { %v1497_v51 = vmax.f32 %v801_v11, %v802_v1  ;;  %v899_v26 = vmax.f32 %v1476_v39, %v607_v4  ;;  %v668_v33 = vmax.f32 %v666_v2, %v667_v48  ;;  %v805_v49 = vrot.slane %v804_v15, 4 }
 0x100   :  { %v967_v13 = vsel %vm954_vm4, %v898_v59, %v966_v40  ;;  %v812_v14 = vrot.slane %v811_v24, 4  ;;  %v818_v52 = vsel %vm439_vm2, %v383_v16, -inf  ;;  %v825_v46 = vsel %vm439_vm2, %v384_v27, -inf }
 0x101   :  { %v675_v7 = vmax.f32 %v673_v9, %v674_v29  ;;  %v682_v50 = vmax.f32 %v680_v12, %v681_v31  ;;  %v688_v56 = vrot.slane %v687_v17, 2  ;;  %v806_v60 = vmax.f32 %v804_v15, %v805_v49 }
 0x102   :  { %v813_v45 = vmax.f32 %v811_v24, %v812_v14  ;;  %v819_v63 = vrot.slane %v818_v52, 4  ;;  %v826_v11 = vrot.slane %v825_v46, 4  ;;  %v287_v1 = vadd.f32 %v1424_v41, %v238_v10 }
 0x103   :  { %v1505_v39 = vsel %vm956_vm5, %v899_v26, %v967_v13  ;;  %v669_v2 = vrot.slane %v668_v33, 1  ;;  %v807_v4 = vrot.slane %v806_v60, 2  ;;  %v294_v6 = vadd.f32 %v293_v43, %v1382_v62 }
 0x104   :  { %v814_v25 = vrot.slane %v813_v45, 2  ;;  %v820_v48 = vmax.f32 %v818_v52, %v819_v63  ;;  %v827_v23 = vmax.f32 %v825_v46, %v826_v11  ;;  %v317_v34 = vmax.f32 %v287_v1, 0.0 }
 0x105   :  { %v676_v9 = vrot.slane %v675_v7, 1  ;;  %v683_v12 = vrot.slane %v682_v50, 1  ;;  %v689_v59 = vmax.f32 %v687_v17, %v688_v56  ;;  %v808_v16 = vmax.f32 %v806_v60, %v807_v4 }
 0x106   :  { %v815_v27 = vmax.f32 %v813_v45, %v814_v25  ;;  %v821_v40 = vrot.slane %v820_v48, 2  ;;  %v828_v29 = vrot.slane %v827_v23, 2  ;;  %v361_v31 = vrot.slane %v317_v34, 2 }
 0x107   :  { %v809_v41 = vrot.slane %v808_v16, 1  ;;  %v362_v15 = vrot.slane %v317_v34, 4  ;;  %v363_v24 = vrot.slane %v317_v34, 6  ;;  %v608_v10 = vsel %vm439_vm2, %v317_v34, -inf }
 0x108   :  { %v816_v26 = vrot.slane %v815_v27, 1  ;;  %v822_v49 = vmax.f32 %v820_v48, %v821_v40  ;;  %v829_v62 = vmax.f32 %v827_v23, %v828_v29  ;;  %v609_v13 = vrot.slane %v608_v10, 4 }
 0x109   :  { %v690_v14 = vrot.slane %v689_v59, 1  ;;  %v615_v52 = vsel %vm439_vm2, %v361_v31, -inf  ;;  %v622_v46 = vsel %vm439_vm2, %v362_v15, -inf  ;;  %v629_v17 = vsel %vm439_vm2, %v363_v24, -inf }
 0x10a   :  { %v817_v43 = vmax.f32 %v815_v27, %v816_v26  ;;  %v823_v56 = vrot.slane %v822_v49, 1  ;;  %v610_v60 = vmax.f32 %v608_v10, %v609_v13  ;;  %v320_v45 = vmax.f32 %v294_v6, 0.0  ;;  %v239_v26 = vpop.f32.mrf.mxu0 }
 0x10b   :  { %v830_v63 = vrot.slane %v829_v62, 1  ;;  %v616_v11 = vrot.slane %v615_v52, 4  ;;  %v623_v1 = vrot.slane %v622_v46, 4  ;;  %v630_v4 = vrot.slane %v629_v17, 4 }
 0x10c   :  { %v1512_v25 = vmax.f32 %v668_v33, %v669_v2  ;;  %v1514_v48 = vmax.f32 %v675_v7, %v676_v9  ;;  %v810_v23 = vmax.f32 %v808_v16, %v809_v41  ;;  %v824_v34 = vmax.f32 %v822_v49, %v823_v56 }
 0x10d   :  { %v611_v40 = vrot.slane %v610_v60, 2  ;;  %v617_v29 = vmax.f32 %v615_v52, %v616_v11  ;;  %v624_v31 = vmax.f32 %v622_v46, %v623_v1  ;;  %v631_v15 = vmax.f32 %v629_v17, %v630_v4 }
 0x10e   :  { %v1516_v24 = vmax.f32 %v682_v50, %v683_v12  ;;  %v1518_v27 = vmax.f32 %v689_v59, %v690_v14  ;;  %v913_v6 = vmax.f32 %v1488_v32, %v817_v43  ;;  %v370_v10 = vrot.slane %v320_v45, 2 }
 0x10f   :  { %v1521_v13 = vmax.f32 %v829_v62, %v830_v63  ;;  %v618_v33 = vrot.slane %v617_v29, 2  ;;  %v625_v7 = vrot.slane %v624_v31, 2  ;;  %v371_v2 = vrot.slane %v320_v45, 4 }
 0x110   :  { %v912_v9 = vmax.f32 %v1481_v54, %v810_v23  ;;  %v372_v16 = vrot.slane %v320_v45, 6  ;;  %v692_v41 = vsel %vm439_vm2, %v320_v45, -inf  ;;  %v258_v49 = vadd.f32 %v1347_v61, %v257_v18  ;;  %v306_v18 = vpop.f32.mrf.mxu3 }
 0x111   :  { %v914_v50 = vmax.f32 %v1492_v42, %v824_v34  ;;  %v612_v12 = vmax.f32 %v610_v60, %v611_v40  ;;  %v632_v59 = vrot.slane %v631_v15, 2  ;;  %v240_v32 = vadd.f32 %v1347_v61, %v239_v26 }
 0x112   :  { %v980_v14 = vsel %vm952_vm3, %v913_v6, %v912_v9  ;;  %v693_v62 = vrot.slane %v692_v41, 4  ;;  %v699_v52 = vsel %vm439_vm2, %v370_v10, -inf  ;;  %v706_v46 = vsel %vm439_vm2, %v371_v2, -inf }
 0x113   :  { %v619_v17 = vmax.f32 %v617_v29, %v618_v33  ;;  %v1533_v43 = vmax.f32 %v624_v31, %v625_v7  ;;  %v700_v56 = vrot.slane %v699_v52, 4  ;;  %v707_v60 = vrot.slane %v706_v46, 4 }
 0x114   :  { %v694_v42 = vmax.f32 %v692_v41, %v693_v62  ;;  %v713_v45 = vsel %vm439_vm2, %v372_v16, -inf  ;;  %v307_v61 = vadd.f32 %v306_v18, %v258_v49  ;;  %v1537_v63 = vsel %vm954_vm4, %v914_v50, %v980_v14 }
 0x115   :  { %v613_v11 = vrot.slane %v612_v12, 1  ;;  %v1539_v1 = vmax.f32 %v631_v15, %v632_v59  ;;  %v701_v4 = vmax.f32 %v699_v52, %v700_v56  ;;  %v708_v34 = vmax.f32 %v706_v46, %v707_v60 }
 0x116   :  { %v695_v23 = vrot.slane %v694_v42, 2  ;;  %v714_v40 = vrot.slane %v713_v45, 4  ;;  %v325_v29 = vmax.f32 %v307_v61, 0.0  ;;  %v620_v31 = vrot.slane %v619_v17, 1 }
 0x117   :  { %v627_v6 = vrot.slane %v1533_v43, 1  ;;  %v702_v10 = vrot.slane %v701_v4, 2  ;;  %v289_v26 = vadd.f32 %v1448_v30, %v240_v32  ;;  %v709_v7 = vrot.slane %v708_v34, 2 }
 0x118   :  { %v696_v33 = vmax.f32 %v694_v42, %v695_v23  ;;  %v715_v2 = vmax.f32 %v713_v45, %v714_v40  ;;  %v385_v9 = vrot.slane %v325_v29, 2  ;;  %v386_v41 = vrot.slane %v325_v29, 4 }
 0x119   :  { %v703_v16 = vmax.f32 %v701_v4, %v702_v10  ;;  %v387_v49 = vrot.slane %v325_v29, 6  ;;  %v832_v15 = vsel %vm439_vm2, %v325_v29, -inf  ;;  %v710_v59 = vmax.f32 %v708_v34, %v709_v7 }
 0x11a   :  { %v697_v50 = vrot.slane %v696_v33, 1  ;;  %v716_v14 = vrot.slane %v715_v2, 2  ;;  %v833_v62 = vrot.slane %v832_v15, 4  ;;  %v839_v46 = vsel %vm439_vm2, %v385_v9, -inf }
 0x11b   :  { %v704_v52 = vrot.slane %v703_v16, 1  ;;  %v846_v18 = vsel %vm439_vm2, %v386_v41, -inf  ;;  %v853_v30 = vsel %vm439_vm2, %v387_v49, -inf  ;;  %v711_v56 = vrot.slane %v710_v59, 1 }
 0x11c   :  { %v698_v32 = vmax.f32 %v696_v33, %v697_v50  ;;  %v717_v42 = vmax.f32 %v715_v2, %v716_v14  ;;  %v834_v60 = vmax.f32 %v832_v15, %v833_v62  ;;  %v840_v61 = vrot.slane %v839_v46, 4 }
 0x11d   :  { %v705_v45 = vmax.f32 %v703_v16, %v704_v52  ;;  %v847_v4 = vrot.slane %v846_v18, 4  ;;  %v854_v23 = vrot.slane %v853_v30, 4  ;;  %v712_v40 = vmax.f32 %v710_v59, %v711_v56 }
 0x11e   :  { %v718_v29 = vrot.slane %v717_v42, 1  ;;  %v904_v34 = vmax.f32 %v1512_v25, %v698_v32  ;;  %v835_v10 = vrot.slane %v834_v60, 2  ;;  %v841_v9 = vmax.f32 %v839_v46, %v840_v61  ;;  %v259_v25 = vpop.f32.mrf.mxu2 }
 0x11f   :  { %v905_v7 = vmax.f32 %v1514_v48, %v705_v45  ;;  %v848_v54 = vmax.f32 %v846_v18, %v847_v4  ;;  %v855_v41 = vmax.f32 %v853_v30, %v854_v23  ;;  %v1549_v53 = vmax.f32 %v612_v12, %v613_v11  ;;  %v308_v23 = vpop.f32.mrf.mxu3 }
 0x120   :  { %v719_v33 = vmax.f32 %v717_v42, %v718_v29  ;;  %v906_v2 = vmax.f32 %v1516_v24, %v712_v40  ;;  %v318_v49 = vmax.f32 %v289_v26, 0.0  ;;  %v634_v16 = vrot.slane %v1539_v1, 1 }
 0x121   :  { %v973_v15 = vsel %vm952_vm3, %v905_v7, %v904_v34  ;;  %v1554_v50 = vmax.f32 %v834_v60, %v835_v10  ;;  %v842_v59 = vrot.slane %v841_v9, 2  ;;  %v1556_v14 = vmax.f32 %v619_v17, %v620_v31  ;;  %v1160_v17 = vld [vmem:[%s1648_s2] ss:$0 sm:$0xff]  ;;  %s1187_s2 = smov [#allocation2]  }
 0x122   :  { %v907_v48 = vmax.f32 %v1518_v27, %v719_v33  ;;  %v974_v62 = vsel %vm954_vm4, %v906_v2, %v973_v15  ;;  %v364_v12 = vrot.slane %v318_v49, 2  ;;  %v1561_v11 = vmax.f32 %v1533_v43, %v627_v6  ;;  %s999_s16 = sshll.u32 %s1187_s2, 4  ;;  %s1000_s16 = int_to_ptr.vmem [resolvable:$true] %s999_s16 }
 0x123   :  { %v849_v24 = vrot.slane %v848_v54, 2  ;;  %v856_v26 = vrot.slane %v855_v41, 2  ;;  %v365_v52 = vrot.slane %v318_v49, 4  ;;  %v366_v18 = vrot.slane %v318_v49, 6 }
 0x124   :  { %v975_v46 = vsel %vm956_vm5, %v907_v48, %v974_v62  ;;  %v636_v30 = vsel %vm439_vm2, %v318_v49, -inf  ;;  %v260_v31 = vadd.f32 %v1160_v17, %v259_v25  ;;  %v1569_v27 = vmax.f32 %v1539_v1, %v634_v16 }
 0x125   :  { %v837_v32 = vrot.slane %v1554_v50, 1  ;;  %v1572_v43 = vmax.f32 %v841_v9, %v842_v59  ;;  %v637_v6 = vrot.slane %v636_v30, 4  ;;  %v643_v56 = vsel %vm439_vm2, %v364_v12, -inf }
 0x126   :  { %v650_v42 = vsel %vm439_vm2, %v365_v52, -inf  ;;  %v657_v60 = vsel %vm439_vm2, %v366_v18, -inf  ;;  %v976_v45 = vsel %vm958_vm6, %v908_v44, %v975_v46  ;;  %v1581_v61 = vmax.f32 %v848_v54, %v849_v24 }
 0x127   :  { %v1583_v1 = vmax.f32 %v855_v41, %v856_v26  ;;  %v644_v4 = vrot.slane %v643_v56, 4  ;;  %v638_v40 = vmax.f32 %v636_v30, %v637_v6  ;;  %v651_v29 = vrot.slane %v650_v42, 4 }
 0x128   :  { %v658_v34 = vrot.slane %v657_v60, 4  ;;  %v309_v10 = vadd.f32 %v308_v23, %v260_v31  ;;  %v844_v7 = vrot.slane %v1572_v43, 1  ;;  %v961_v57 = vsel %vm960_vm7, %v893_v19, %v1441_v20 }
 0x129   :  { %v645_v9 = vmax.f32 %v643_v56, %v644_v4  ;;  %v639_v21 = vrot.slane %v638_v40, 2  ;;  %v652_v44 = vmax.f32 %v650_v42, %v651_v29  ;;  %v963_v2 = vsel %vm962_vm8, %v894_v3, %v961_v57 }
 0x12a   :  { %v659_v54 = vmax.f32 %v657_v60, %v658_v34  ;;  %v326_v41 = vmax.f32 %v309_v10, 0.0  ;;  %v1650_v49 = vmax.f32 %v1406_v58, %v1446_v28  ;;  %v851_v34 = vrot.slane %v1581_v61, 1 }
 0x12b   :  { %v646_v33 = vrot.slane %v645_v9, 2  ;;  %v640_v38 = vmax.f32 %v638_v40, %v639_v21  ;;  %v653_v36 = vrot.slane %v652_v44, 2 }
 0x12c   :  { %v977_v16 = vsel %vm960_vm7, %v1650_v49, %v976_v45  ;;  %v660_v19 = vrot.slane %v659_v54, 2  ;;  %v388_v20 = vrot.slane %v326_v41, 2  ;;  %v389_v59 = vrot.slane %v326_v41, 4 }
 0x12d   :  { %v647_v15 = vmax.f32 %v645_v9, %v646_v33  ;;  %v390_v25 = vrot.slane %v326_v41, 6  ;;  %v860_v48 = vsel %vm439_vm2, %v326_v41, -inf  ;;  %v641_v62 = vrot.slane %v640_v38, 1 }
 0x12e   :  { %v654_v12 = vmax.f32 %v652_v44, %v653_v36  ;;  %v661_v47 = vmax.f32 %v659_v54, %v660_v19  ;;  %v861_v37 = vrot.slane %v860_v48, 4  ;;  %v867_v24 = vsel %vm439_vm2, %v388_v20, -inf }
 0x12f   :  { %v648_v3 = vrot.slane %v647_v15, 1  ;;  %v874_v58 = vsel %vm439_vm2, %v389_v59, -inf  ;;  %v881_v28 = vsel %vm439_vm2, %v390_v25, -inf  ;;  %v642_v26 = vmax.f32 %v640_v38, %v641_v62 }
 0x130   :  { %v655_v52 = vrot.slane %v654_v12, 1  ;;  %v662_v46 = vrot.slane %v661_v47, 1  ;;  %v862_v18 = vmax.f32 %v860_v48, %v861_v37  ;;  %v868_v17 = vrot.slane %v867_v24, 4 }
 0x131   :  { %v649_v30 = vmax.f32 %v647_v15, %v648_v3  ;;  %v875_v31 = vrot.slane %v874_v58, 4  ;;  %v882_v6 = vrot.slane %v881_v28, 4  ;;  %v900_v60 = vmax.f32 %v1549_v53, %v642_v26 }
 0x132   :  { %v656_v56 = vmax.f32 %v654_v12, %v655_v52  ;;  %v663_v42 = vmax.f32 %v661_v47, %v662_v46  ;;  %v863_v45 = vrot.slane %v862_v18, 2  ;;  %v869_v23 = vmax.f32 %v867_v24, %v868_v17 }
 0x133   :  { %v901_v4 = vmax.f32 %v1556_v14, %v649_v30  ;;  %v876_v40 = vmax.f32 %v874_v58, %v875_v31  ;;  %v883_v29 = vmax.f32 %v881_v28, %v882_v6  ;;  %v969_v9 = vsel %vm958_vm6, %v900_v60, %v1505_v39 }
 0x134   :  { %v902_v10 = vmax.f32 %v1561_v11, %v656_v56  ;;  %v864_v57 = vmax.f32 %v862_v18, %v863_v45  ;;  %v870_v21 = vrot.slane %v869_v23, 2  ;;  %v1651_v53 = vmax.f32 %v1400_v55, %v1431_v0 }
 0x135   :  { %v877_v44 = vrot.slane %v876_v40, 2  ;;  %v884_v54 = vrot.slane %v883_v29, 2  ;;  %v903_v14 = vmax.f32 %v1569_v27, %v663_v42  ;;  %v970_v49 = vsel %vm960_vm7, %v901_v4, %v969_v9 }
 0x136   :  { %v965_v41 = vsel %vm964_vm9, %v1651_v53, %v963_v2  ;;  %v865_v33 = vrot.slane %v864_v57, 1  ;;  %v1652_v11 = vmax.f32 %v1410_v8, %v1452_v35  ;;  %v871_v39 = vmax.f32 %v869_v23, %v870_v21 }
 0x137   :  { %991 = vst [vmem:[#allocation2] sm:$0xff] %v965_v41  ;;  %v878_v36 = vmax.f32 %v876_v40, %v877_v44  ;;  %v885_v19 = vmax.f32 %v883_v29, %v884_v54  ;;  %v971_v20 = vsel %vm962_vm8, %v902_v10, %v970_v49  ;;  %v838_v55 = vmax.f32 %v1554_v50, %v837_v32 }
 0x138   :  { %v978_v38 = vsel %vm962_vm8, %v1652_v11, %v977_v16  ;;  %v866_v0 = vmax.f32 %v864_v57, %v865_v33  ;;  %v972_v27 = vsel %vm964_vm9, %v903_v14, %v971_v20  ;;  %v1653_v2 = vmax.f32 %v1417_v22, %v1454_v5 }
 0x139   :  { %v858_v35 = vrot.slane %v1583_v1, 1  ;;  %v872_v16 = vrot.slane %v871_v39, 1  ;;  %v879_v15 = vrot.slane %v878_v36, 1  ;;  %v886_v59 = vrot.slane %v885_v19, 1  ;;  %992 = vst [vmem:[#allocation2 + $0x8] sm:$0xff] %v972_v27 }
 0x13a   :  { %v979_v8 = vsel %vm964_vm9, %v1653_v2, %v978_v38  ;;  %v1654_v25 = vmax.f32 %v1497_v51, %v1521_v13  ;;  %v845_v32 = vmax.f32 %v1572_v43, %v844_v7  ;;  %v916_v48 = vmax.f32 %v838_v55, %v866_v0 }
 0x13b   :  { %993 = vst [vmem:[#allocation2 + $0x10] sm:$0xff] %v979_v8  ;;  %v852_v22 = vmax.f32 %v1581_v61, %v851_v34  ;;  %v873_v5 = vmax.f32 %v871_v39, %v872_v16  ;;  %v880_v62 = vmax.f32 %v878_v36, %v879_v15  ;;  %v887_v12 = vmax.f32 %v885_v19, %v886_v59 }
 0x13c   :  { %v982_v50 = vsel %vm956_vm5, %v1654_v25, %v1537_v63  ;;  %v859_v51 = vmax.f32 %v1583_v1, %v858_v35 }
 0x13d   :  { %v983_v47 = vsel %vm958_vm6, %v916_v48, %v982_v50  ;;  %v917_v13 = vmax.f32 %v845_v32, %v873_v5  ;;  %v918_v63 = vmax.f32 %v852_v22, %v880_v62 }
 0x13e   :  { %v919_v43 = vmax.f32 %v859_v51, %v887_v12 }
 0x13f   :  { %v984_v7 = vsel %vm960_vm7, %v917_v13, %v983_v47 }
 0x140   :  { %v985_v61 = vsel %vm962_vm8, %v918_v63, %v984_v7 }
 0x141   :  { %v986_v37 = vsel %vm964_vm9, %v919_v43, %v985_v61 }
 0x142   :  { %994 = vst [vmem:[#allocation2 + $0x18] sm:$0xff] %v986_v37 }
 0x143   :  { %1007 = dma.vmem_to_hbm [thread:$0]  %s1000_s16, 512, %s1002_s19, [#allocation3], %s1188_s20, %s1188_s20, %s1189_s21  }
 0x144   :  { %1185 = dma.done.wait [#allocation3], 512  }
 0x145   :  { %1186 = vsyncadd [#allocation3], 4294966784 }
 0x146   :  { %1012 = vsyncpa [#allocation3], 1 }

</bundles_post_ra>
